<compile_context>
chip_gen: v7x
topology: tpu7x:2x2x1
jax: 0.10.0
libtpu: 0.0.40
codegen_flags: <defaults>
</compile_context>

<pallas_src>
import functools

import jax
import jax.numpy as jnp
from jax.experimental import pallas as pl
from jax.experimental.pallas import tpu as pltpu


def _round_up(x, m):
    return (x + m - 1) // m * m


def _mlp_kernel(x_ref, w1_ref, b12_ref, w2_ref, w3_ref, b3_ref, o_ref,
                *, output_activation, num_valid_outputs):
    # x_ref: (bm, In) bf16   w*: bf16 (resident)   b12: (2, H) f32   b3: (1, N) f32
    x = x_ref[...]

    h1 = jnp.dot(x, w1_ref[...], preferred_element_type=jnp.float32)
    h1 = jnp.maximum(h1 + b12_ref[0:1, :], 0.0)          # ReLU, f32

    h2 = jnp.dot(h1.astype(w2_ref.dtype), w2_ref[...],
                 preferred_element_type=jnp.float32)
    h2 = jnp.maximum(h2 + b12_ref[1:2, :], 0.0)          # ReLU, f32

    out = jnp.dot(h2.astype(w3_ref.dtype), w3_ref[...],
                  preferred_element_type=jnp.float32)
    out = out + b3_ref[...]

    if output_activation == 'relu':
        out = jnp.maximum(out, 0.0)
    elif output_activation == 'softmax':
        # Mask lane-padding columns so they don't enter the softmax sum.
        lane = jax.lax.broadcasted_iota(jnp.int32, out.shape, 1)
        out = jnp.where(lane < num_valid_outputs, out, -jnp.inf)
        m = jnp.max(out, axis=-1, keepdims=True)
        e = jnp.exp(out - m)
        denom = jnp.sum(e, axis=-1, keepdims=True)
        out = e * pl.reciprocal(denom, approx=True)      # EUP, not VALU divide

    o_ref[...] = out.astype(o_ref.dtype)


def mlp_forward(x, params, output_activation=None, *, block_batch=512,
                compute_dtype=jnp.bfloat16):
    """3-layer MLP forward pass in one Pallas call.

    x:       (B, num_inputs) float32
    params:  dict with w1 (in,H), b1 (1,H), w2 (H,H), b2 (1,H),
             w3 (H,out), b3 (1,out)   -- all float32, torch.nn.Linear semantics
    """
    w1, b1 = params["w1"], params["b1"]
    w2, b2 = params["w2"], params["b2"]
    w3, b3 = params["w3"], params["b3"]

    B, num_inputs = x.shape
    hidden = w1.shape[1]
    num_outputs = w3.shape[1]

    # --- lane-dense output: pad output feature dim to a multiple of 128 ------
    n_pad = _round_up(num_outputs, 128)
    if n_pad != num_outputs:
        w3 = jnp.pad(w3, ((0, 0), (0, n_pad - num_outputs)))
        b3 = jnp.pad(b3, ((0, 0), (0, n_pad - num_outputs)))

    # --- batch tiling: bm rows per grid step, batch padded to a multiple -----
    bm = min(block_batch, _round_up(B, 8))
    bm = _round_up(bm, 8)
    b_pad = _round_up(B, bm)
    if b_pad != B:
        x = jnp.pad(x, ((0, b_pad - B), (0, 0)))
    grid = (b_pad // bm,)

    # --- dtype plumbing: bf16 operands for the MXU, f32 biases/accumulation --
    x_c = x.astype(compute_dtype)
    w1_c = w1.astype(compute_dtype)
    w2_c = w2.astype(compute_dtype)
    w3_c = w3.astype(compute_dtype)
    b12 = jnp.concatenate([b1, b2], axis=0).astype(jnp.float32)   # (2, H), one DMA
    b3_c = b3.astype(jnp.float32)

    kernel = functools.partial(_mlp_kernel,
                               output_activation=output_activation,
                               num_valid_outputs=num_outputs)

    # Resident (weight/bias) specs: same block index every grid step -> one DMA.
    def resident(a):
        nd = a.ndim
        return pl.BlockSpec(a.shape, lambda i, _nd=nd: (0,) * _nd)

    # Advisory cost estimate for XLA scheduling around the custom call.
    flops = 2 * b_pad * (num_inputs * hidden + hidden * hidden + hidden * n_pad)
    transcendentals = b_pad * n_pad if output_activation == 'softmax' else 0
    bytes_accessed = (
        b_pad * num_inputs * 2                       # x (bf16)
        + (num_inputs * hidden + hidden * hidden + hidden * n_pad) * 2
        + (2 * hidden + n_pad) * 4                   # biases (f32)
        + b_pad * n_pad * 4)                         # out (f32)

    # VMEM budget: resident weights + double-buffered x/out blocks + headroom.
    vmem_bytes = (
        (num_inputs * hidden + hidden * hidden + hidden * n_pad) * 2
        + 2 * (bm * _round_up(num_inputs, 128) * 2 + bm * n_pad * 4)
        + (4 << 20))
    vmem_limit = int(min(max(2 * vmem_bytes, 16 << 20), 64 << 20))

    out = pl.pallas_call(
        kernel,
        out_shape=jax.ShapeDtypeStruct((b_pad, n_pad), jnp.float32),
        grid_spec=pltpu.PrefetchScalarGridSpec(
            num_scalar_prefetch=0,
            grid=grid,
            in_specs=[pl.BlockSpec((bm, num_inputs), lambda i: (i, 0)),
                      resident(w1_c), resident(b12), resident(w2_c),
                      resident(w3_c), resident(b3_c)],
            out_specs=pl.BlockSpec((bm, n_pad), lambda i: (i, 0)),
        ),
        compiler_params=pltpu.CompilerParams(
            dimension_semantics=("parallel",),
            vmem_limit_bytes=vmem_limit),
        cost_estimate=pl.CostEstimate(flops=int(flops),
                                      transcendentals=int(transcendentals),
                                      bytes_accessed=int(bytes_accessed)),
    )(x_c, w1_c, b12, w2_c, w3_c, b3_c)

    return out[:B, :num_outputs]


def xavier_uniform(key, fan_in, fan_out, gain=1.0):
    # Matches torch.nn.init.xavier_uniform_ semantics.
    limit = gain * jnp.sqrt(6.0 / (fan_in + fan_out))
    return jax.random.uniform(key, (fan_in, fan_out), jnp.float32,
                              minval=-limit, maxval=limit)


def init_mlp_params(key, num_inputs, hidden_dim, num_outputs):
    k1, k2, k3 = jax.random.split(key, 3)
    return {
        "w1": xavier_uniform(k1, num_inputs, hidden_dim),
        "b1": jnp.zeros((1, hidden_dim), jnp.float32),
        "w2": xavier_uniform(k2, hidden_dim, hidden_dim),
        "b2": jnp.zeros((1, hidden_dim), jnp.float32),
        "w3": xavier_uniform(k3, hidden_dim, num_outputs),
        "b3": jnp.zeros((1, num_outputs), jnp.float32),
    }


def mlp_reference(x, params, output_activation=None, compute_dtype=jnp.bfloat16):
    # Mirrors the kernel's bf16-operand / f32-accumulate math for tight checks.
    dt = compute_dtype
    h = jnp.dot(x.astype(dt), params["w1"].astype(dt),
                preferred_element_type=jnp.float32) + params["b1"]
    h = jnp.maximum(h, 0.0)
    h = jnp.dot(h.astype(dt), params["w2"].astype(dt),
                preferred_element_type=jnp.float32) + params["b2"]
    h = jnp.maximum(h, 0.0)
    out = jnp.dot(h.astype(dt), params["w3"].astype(dt),
                  preferred_element_type=jnp.float32) + params["b3"]
    if output_activation == 'relu':
        out = jnp.maximum(out, 0.0)
    elif output_activation == 'softmax':
        out = jax.nn.softmax(out, axis=-1)
    return out


if __name__ == "__main__":
    num_inputs, hidden_dim, num_outputs = 16, 32, 8
    batch = 8

    key = jax.random.PRNGKey(0)
    kx, kp = jax.random.split(key)

    x = jax.random.normal(kx, (batch, num_inputs), jnp.float32)
    params = init_mlp_params(kp, num_inputs, hidden_dim, num_outputs)

    # Default path (output_activation=None), as in MLP.forward(inputs).
    out = jax.block_until_ready(mlp_forward(x, params, None))
    ref = mlp_reference(x, params, None)
    assert out.shape == (batch, num_outputs)
    assert jnp.allclose(out, ref, atol=1e-3, rtol=1e-3)

    # 'relu' output activation branch.
    out_r = jax.block_until_ready(mlp_forward(x, params, 'relu'))
    ref_r = mlp_reference(x, params, 'relu')
    assert jnp.allclose(out_r, ref_r, atol=1e-3, rtol=1e-3)

    # 'softmax' branch (approx reciprocal on EUP -> slightly looser tolerance).
    out_s = jax.block_until_ready(mlp_forward(x, params, 'softmax'))
    ref_s = mlp_reference(x, params, 'softmax')
    assert jnp.allclose(out_s, ref_s, atol=5e-3, rtol=5e-3)

    # Multi-step batch grid + batch-padding path (B not a multiple of bm).
    x2 = jax.random.normal(jax.random.PRNGKey(1), (300, num_inputs), jnp.float32)
    out2 = jax.block_until_ready(mlp_forward(x2, params, None, block_batch=128))
    ref2 = mlp_reference(x2, params, None)
    assert out2.shape == (300, num_outputs)
    assert jnp.allclose(out2, ref2, atol=1e-3, rtol=1e-3)

    print("KERNEL_OK")
</pallas_src>

<mosaic_0001>
module attributes {stable_mosaic.version = 11 : i64} {
  func.func @_mlp_kernel(%arg0: i32, %arg1: memref<8x16xbf16, #tpu.memory_space<vmem>>, %arg2: memref<16x32xbf16, #tpu.memory_space<vmem>>, %arg3: memref<2x32xf32, #tpu.memory_space<vmem>>, %arg4: memref<32x32xbf16, #tpu.memory_space<vmem>>, %arg5: memref<32x128xbf16, #tpu.memory_space<vmem>>, %arg6: memref<1x128xf32, #tpu.memory_space<vmem>>, %arg7: memref<8x128xf32, #tpu.memory_space<vmem>>) attributes {dimension_semantics = [#tpu.dimension_semantics<parallel>], iteration_bounds = array<i64: 1>, scalar_prefetch = 0 : i64, scratch_operands = 0 : i64, tpu.core_type = #tpu.core_type<tc>, window_params = [{transform_indices = @transform_0, window_bounds = array<i64: 8, 16>}, {pipeline_mode = #tpu.pipeline_mode<synchronous>, transform_indices = @transform_1, window_bounds = array<i64: 16, 32>}, {pipeline_mode = #tpu.pipeline_mode<synchronous>, transform_indices = @transform_2, window_bounds = array<i64: 2, 32>}, {pipeline_mode = #tpu.pipeline_mode<synchronous>, transform_indices = @transform_3, window_bounds = array<i64: 32, 32>}, {pipeline_mode = #tpu.pipeline_mode<synchronous>, transform_indices = @transform_4, window_bounds = array<i64: 32, 128>}, {pipeline_mode = #tpu.pipeline_mode<synchronous>, transform_indices = @transform_5, window_bounds = array<i64: 1, 128>}, {transform_indices = @transform_6, window_bounds = array<i64: 8, 128>}]} {
    %c0 = arith.constant 0 : index
    %c0_0 = arith.constant 0 : index
    %0 = vector.load %arg1[%c0, %c0_0] : memref<8x16xbf16, #tpu.memory_space<vmem>>, vector<8x16xbf16>
    %c0_1 = arith.constant 0 : index
    %c0_2 = arith.constant 0 : index
    %1 = vector.load %arg2[%c0_1, %c0_2] : memref<16x32xbf16, #tpu.memory_space<vmem>>, vector<16x32xbf16>
    %cst = arith.constant dense<0.000000e+00> : vector<8x32xf32>
    %2 = tpu.matmul %0, %1, %cst {dimension_numbers = #tpu.dot_dimension_numbers<[1], [0], [0], [1], [0, 0, 1, 1], [], []>} : vector<8x16xbf16>, vector<16x32xbf16>, vector<8x32xf32> -> vector<8x32xf32>
    %c0_3 = arith.constant 0 : index
    %c0_4 = arith.constant 0 : index
    %3 = vector.load %arg3[%c0_3, %c0_4] : memref<2x32xf32, #tpu.memory_space<vmem>>, vector<1x32xf32>
    %4 = vector.broadcast %3 : vector<1x32xf32> to vector<8x32xf32>
    %5 = arith.addf %2, %4 : vector<8x32xf32>
    %cst_5 = arith.constant 0.000000e+00 : f32
    %6 = vector.broadcast %cst_5 : f32 to vector<8x32xf32>
    %7 = arith.maximumf %5, %6 : vector<8x32xf32>
    %8 = arith.truncf %7 : vector<8x32xf32> to vector<8x32xbf16>
    %c0_6 = arith.constant 0 : index
    %c0_7 = arith.constant 0 : index
    %9 = vector.load %arg4[%c0_6, %c0_7] : memref<32x32xbf16, #tpu.memory_space<vmem>>, vector<32x32xbf16>
    %cst_8 = arith.constant dense<0.000000e+00> : vector<8x32xf32>
    %10 = tpu.matmul %8, %9, %cst_8 {dimension_numbers = #tpu.dot_dimension_numbers<[1], [0], [0], [1], [0, 0, 1, 1], [], []>} : vector<8x32xbf16>, vector<32x32xbf16>, vector<8x32xf32> -> vector<8x32xf32>
    %c1 = arith.constant 1 : index
    %c0_9 = arith.constant 0 : index
    %11 = vector.load %arg3[%c1, %c0_9] : memref<2x32xf32, #tpu.memory_space<vmem>>, vector<1x32xf32>
    %12 = vector.broadcast %11 : vector<1x32xf32> to vector<8x32xf32>
    %13 = arith.addf %10, %12 : vector<8x32xf32>
    %cst_10 = arith.constant 0.000000e+00 : f32
    %14 = vector.broadcast %cst_10 : f32 to vector<8x32xf32>
    %15 = arith.maximumf %13, %14 : vector<8x32xf32>
    %16 = arith.truncf %15 : vector<8x32xf32> to vector<8x32xbf16>
    %c0_11 = arith.constant 0 : index
    %c0_12 = arith.constant 0 : index
    %17 = vector.load %arg5[%c0_11, %c0_12] : memref<32x128xbf16, #tpu.memory_space<vmem>>, vector<32x128xbf16>
    %cst_13 = arith.constant dense<0.000000e+00> : vector<8x128xf32>
    %18 = tpu.matmul %16, %17, %cst_13 {dimension_numbers = #tpu.dot_dimension_numbers<[1], [0], [0], [1], [0, 0, 1, 1], [], []>} : vector<8x32xbf16>, vector<32x128xbf16>, vector<8x128xf32> -> vector<8x128xf32>
    %c0_14 = arith.constant 0 : index
    %c0_15 = arith.constant 0 : index
    %19 = vector.load %arg6[%c0_14, %c0_15] : memref<1x128xf32, #tpu.memory_space<vmem>>, vector<1x128xf32>
    %20 = vector.broadcast %19 : vector<1x128xf32> to vector<8x128xf32>
    %21 = arith.addf %18, %20 : vector<8x128xf32>
    %c0_16 = arith.constant 0 : index
    %c0_17 = arith.constant 0 : index
    %22 = vector.load %arg7[%c0_16, %c0_17] : memref<8x128xf32, #tpu.memory_space<vmem>>, vector<8x128xf32>
    tpu.vector_store %arg7[%c0_16, %c0_17], %21 {strides = array<i32>} : memref<8x128xf32, #tpu.memory_space<vmem>>, vector<8x128xf32>,
    return
  }
  func.func @transform_0(%arg0: i32) -> (i32, i32) {
    %c0_i32 = arith.constant 0 : i32
    %c0_i32_0 = arith.constant 0 : i32
    return %arg0, %c0_i32 : i32, i32
  }
  func.func @transform_1(%arg0: i32) -> (i32, i32) {
    %c0_i32 = arith.constant 0 : i32
    %c0_i32_0 = arith.constant 0 : i32
    %c0_i32_1 = arith.constant 0 : i32
    return %c0_i32, %c0_i32_0 : i32, i32
  }
  func.func @transform_2(%arg0: i32) -> (i32, i32) {
    %c0_i32 = arith.constant 0 : i32
    %c0_i32_0 = arith.constant 0 : i32
    %c0_i32_1 = arith.constant 0 : i32
    return %c0_i32, %c0_i32_0 : i32, i32
  }
  func.func @transform_3(%arg0: i32) -> (i32, i32) {
    %c0_i32 = arith.constant 0 : i32
    %c0_i32_0 = arith.constant 0 : i32
    %c0_i32_1 = arith.constant 0 : i32
    return %c0_i32, %c0_i32_0 : i32, i32
  }
  func.func @transform_4(%arg0: i32) -> (i32, i32) {
    %c0_i32 = arith.constant 0 : i32
    %c0_i32_0 = arith.constant 0 : i32
    %c0_i32_1 = arith.constant 0 : i32
    return %c0_i32, %c0_i32_0 : i32, i32
  }
  func.func @transform_5(%arg0: i32) -> (i32, i32) {
    %c0_i32 = arith.constant 0 : i32
    %c0_i32_0 = arith.constant 0 : i32
    %c0_i32_1 = arith.constant 0 : i32
    return %c0_i32, %c0_i32_0 : i32, i32
  }
  func.func @transform_6(%arg0: i32) -> (i32, i32) {
    %c0_i32 = arith.constant 0 : i32
    %c0_i32_0 = arith.constant 0 : i32
    return %arg0, %c0_i32 : i32, i32
  }
}

</mosaic_0001>

<bundles_post_ra>
// kernel: tpu_custom_call.1
= control target key start
LH: loop header
LB: loop body
LE: loop exit
PB: predicated region body
PF: predicated region fallthrough
CT: control target
= control target key end

     0   :  { %11 = vsyncpa [#allocation3], 0  ;;  %s584_s0 = inlined_call_operand.hbm [shape: bf16[8,16], index: 0, kind: input, shape index: {}]   ;;  %s585_s1 = inlined_call_operand.hbm [shape: bf16[16,32], index: 1, kind: input, shape index: {}]   ;;  %s586_s2 = inlined_call_operand.vmem [shape: f32[2,32], index: 2, kind: input, shape index: {}]   ;;  %s587_s3 = inlined_call_operand.hbm [shape: bf16[32,32], index: 3, kind: input, shape index: {}]   ;;  %s588_s4 = inlined_call_operand.hbm [shape: bf16[32,128], index: 4, kind: input, shape index: {}]   ;;  %s589_s5 = inlined_call_operand.vmem [shape: f32[1,128], index: 5, kind: input, shape index: {}]   ;;  %s590_s6 = inlined_call_operand.hbm [shape: f32[8,128], index: 6, kind: output, shape index: {}]  }
   0x1   :  { %12 = vsyncpa [#allocation6], 0 }
   0x2   :  { %13 = vsyncpa [#allocation9], 0 }
   0x3   :  { %14 = vsyncpa [#allocation4], 0  ;;  %s462_s21 = smov [#allocation5]   ;;  %s344_s25 = scalar_lea.hbm %s585_s1, 128 }
   0x4   :  { %s30_s22 = sshll.u32 %s462_s21, 4  ;;  %p345_p0 = scmp.ne.s32.totalorder %s585_s1, %s344_s25  ;;  %s31_s22 = int_to_ptr.vmem [resolvable:$true] %s30_s22 }
   0x5   :  { %p348_p1 = scmp.lt.u32.totalorder %s344_s25, %s585_s1 }
   0x7   :  { %p350_p2 = pnand %p348_p1, %p345_p0 }
   0x9   :  { %353 = shalt.err (!%p350_p2)
}
   0xa   :  { %s354_s30 = scalar_lea.vmem %s31_s22, 128  ;;  %p359_p4 = scmp.lt.s32.totalorder %s31_s22, %s31_s22 }
   0xb   :  { %p355_p3 = scmp.ne.s32.totalorder %s31_s22, %s354_s30  ;;  %p360_p5 = scmp.lt.s32.totalorder %s354_s30, %s354_s30 }
   0xd   :  { %p361_p6 = por %p360_p5, %p359_p4 }
   0xf   :  { %p362_p7 = pnand %p361_p6, %p355_p3 }
  0x11   :  { %365 = shalt.err (!%p362_p7)
}
  0x12   :  { %s463_s7 = smov 64   ;;  %s464_s8 = smov 4  }
  0x13   :  { %36 = dma.hbm_to_vmem [thread:$0]  %s585_s1, 128, %s31_s22, [#allocation6], %s463_s7, %s463_s7, %s464_s8  }
  0x14   :  { %s465_s11 = smov [#allocation2]   ;;  %s466_s13 = smov [#allocation7]  }
  0x15   :  { %s21_s12 = sshll.u32 %s465_s11, 4  ;;  %s44_s14 = sshll.u32 %s466_s13, 4  ;;  %s22_s12 = int_to_ptr.vmem [resolvable:$true] %s21_s12  ;;  %s45_s14 = int_to_ptr.vmem [resolvable:$true] %s44_s14 }
  0x16   :  { %s366_s17 = scalar_lea.hbm %s584_s0, 64 }
  0x17   :  { %p367_p8 = scmp.ne.s32.totalorder %s584_s0, %s366_s17  ;;  %p370_p9 = scmp.lt.u32.totalorder %s366_s17, %s584_s0 }
  0x19   :  { %p372_p10 = pnand %p370_p9, %p367_p8 }
  0x1b   :  { %375 = shalt.err (!%p372_p10)
}
  0x1c   :  { %s376_s1 = scalar_lea.vmem %s22_s12, 64  ;;  %p381_p12 = scmp.lt.s32.totalorder %s22_s12, %s22_s12 }
  0x1d   :  { %p377_p11 = scmp.ne.s32.totalorder %s22_s12, %s376_s1  ;;  %p382_p13 = scmp.lt.s32.totalorder %s376_s1, %s376_s1 }
  0x1f   :  { %p383_p0 = por %p382_p13, %p381_p12 }
  0x21   :  { %p384_p1 = pnand %p383_p0, %p377_p11 }
  0x23   :  { %387 = shalt.err (!%p384_p1)
}
  0x24   :  { %24 = dma.hbm_to_vmem [thread:$0]  %s584_s0, 64, %s22_s12, [#allocation3]  }
  0x25   :  { %s388_s26 = scalar_lea.hbm %s587_s3, 256 }
  0x26   :  { %p389_p2 = scmp.ne.s32.totalorder %s587_s3, %s388_s26  ;;  %p392_p3 = scmp.lt.u32.totalorder %s388_s26, %s587_s3 }
  0x28   :  { %p394_p4 = pnand %p392_p3, %p389_p2 }
  0x2a   :  { %397 = shalt.err (!%p394_p4)
}
  0x2b   :  { %s398_s9 = scalar_lea.vmem %s45_s14, 256  ;;  %p403_p6 = scmp.lt.s32.totalorder %s45_s14, %s45_s14 }
  0x2c   :  { %p399_p5 = scmp.ne.s32.totalorder %s45_s14, %s398_s9  ;;  %p404_p7 = scmp.lt.s32.totalorder %s398_s9, %s398_s9 }
  0x2e   :  { %p405_p8 = por %p404_p7, %p403_p6 }
  0x30   :  { %p406_p9 = pnand %p405_p8, %p399_p5 }
  0x32   :  { %409 = shalt.err (!%p406_p9)
}
  0x33   :  { %50 = dma.hbm_to_vmem [thread:$0]  %s587_s3, 256, %s45_s14, [#allocation6], %s463_s7, %s463_s7, %s464_s8  }
  0x34   :  { %s467_s11 = smov [#allocation8]   ;;  %s410_s16 = scalar_lea.hbm %s588_s4, 256 }
  0x35   :  { %s56_s12 = sshll.u32 %s467_s11, 4  ;;  %p411_p10 = scmp.ne.s32.totalorder %s588_s4, %s410_s16  ;;  %s57_s12 = int_to_ptr.vmem [resolvable:$true] %s56_s12 }
  0x36   :  { %p414_p11 = scmp.lt.u32.totalorder %s410_s16, %s588_s4 }
  0x38   :  { %p416_p12 = pnand %p414_p11, %p411_p10 }
  0x3a   :  { %419 = shalt.err (!%p416_p12)
}
  0x3b   :  { %s420_s21 = scalar_lea.vmem %s57_s12, 256  ;;  %p425_p0 = scmp.lt.s32.totalorder %s57_s12, %s57_s12 }
  0x3c   :  { %p421_p13 = scmp.ne.s32.totalorder %s57_s12, %s420_s21  ;;  %p426_p1 = scmp.lt.s32.totalorder %s420_s21, %s420_s21 }
  0x3e   :  { %p427_p2 = por %p426_p1, %p425_p0 }
  0x40   :  { %p428_p3 = pnand %p427_p2, %p421_p13 }
  0x42   :  { %431 = shalt.err (!%p428_p3)
}
  0x43   :  { %62 = dma.hbm_to_vmem [thread:$0]  %s588_s4, 256, %s57_s12, [#allocation9], %s463_s7, %s463_s7, %s464_s8  }
  0x44   :  { %454 = dma.done.wait [#allocation3], 64  }
  0x45   :  { %455 = vsyncadd [#allocation3], 4294967232 }
  0x46   :  { %456 = dma.done.wait [#allocation6], 384  }
  0x47   :  { %457 = vsyncadd [#allocation6], 4294966912 }
  0x48   :  { %458 = dma.done.wait [#allocation9], 256  }
  0x49   :  { %459 = vsyncadd [#allocation9], 4294967040  ;;  %v468_v0 = vmov 0.0   ;;  %vm469_vm0 = vmmov 0   ;;  %v339_v1 = vld [vmem:[#allocation5] sm:$0xff]   ;;  %vm92_vm1 = vcmask 130048  }
  0x4a   :  { %308 = vmatprep.subr.bf16.mxu0 %v468_v0  ;;  %310 = vmatprep.mubr.msk.bf16.mxu0 %vm469_vm0, %v468_v0  ;;  %v78_v2 = vld [vmem:[#allocation2] sm:$0xf]  ;;  %v340_v3 = vld [vmem:[#allocation7] sm:$0xff]   ;;  %v341_v4 = vld [vmem:[#allocation7 + $0x8] sm:$0xff]   ;;  %vm159_vm2 = vcmask 261120   ;;  %s470_s24 = smov [#allocation10]  }
  0x4b   :  { %314 = vmatprep.subr.bf16.mxu1 %v468_v0  ;;  %318 = vmatprep.mubr.msk.bf16.mxu1 %vm469_vm0, %v468_v0  ;;  %v342_v5 = vld [vmem:[#allocation8] sm:$0xff]   ;;  %v343_v14 = vld [vmem:[#allocation8 + $0x8] sm:$0xff]   ;;  %s278_s25 = sshll.u32 %s470_s24, 4  ;;  %s279_s25 = int_to_ptr.vmem [resolvable:$true] %s278_s25 }
  0x4c   :  { %309 = vmatpush3.bf16.msra.mxu0 %v339_v1  ;;  %315 = vmatpush3.bf16.msra.mxu1 %v340_v3  ;;  %v289_v6 = vld [vmem:[%s586_s2] ss:$0 sm:$0xff]  ;;  %v292_v15 = vld [vmem:[%s586_s2 + $0x1] ss:$0 sm:$0xff]  ;;  %s432_s2 = scalar_lea.vmem %s279_s25, 128  ;;  %p437_p5 = scmp.lt.s32.totalorder %s279_s25, %s279_s25 }
  0x4d   :  { %322 = vmatprep.subr.bf16.mxu0 %v468_v0  ;;  %316 = vmatprep.subr.bf16.mxu1 %v468_v0  ;;  %v296_v23 = vld [vmem:[%s589_s5] ss:$0 sm:$0xff]  ;;  %p433_p4 = scmp.ne.s32.totalorder %s279_s25, %s432_s2  ;;  %p438_p6 = scmp.lt.s32.totalorder %s432_s2, %s432_s2 }
  0x4f   :  { %311 = vmatmul.mubr.msk.bf16.vlgmr.msra.gmra.mrb[0].mxu0 %vm92_vm1, %v78_v2  ;;  %p439_p7 = por %p438_p6, %p437_p5 }
  0x50   :  { %326 = vmatprep.mubr.msk.bf16.mxu0 %vm469_vm0, %v468_v0  ;;  %317 = vmatpush3.bf16.msra.mxu1 %v341_v4 }
  0x51   :  { %323 = vmatpush3.bf16.msra.mxu0 %v342_v5  ;;  %p440_p8 = pnand %p439_p7, %p433_p4 }
  0x52   :  { %324 = vmatprep.subr.bf16.mxu0 %v468_v0 }
  0x55   :  { %325 = vmatpush3.bf16.msra.mxu0 %v343_v14 }
 0x122   :  { %v130_v7 = vpop.f32.mrb[0].mxu0 }
 0x123   :  { %v131_v8 = vadd.f32 %v289_v6, %v130_v7  ;;  %v312_v9 = vpop.f32.mrb[1].mxu0 }
 0x124   :  { %v133_v10 = vpop.f32.mrb[2].mxu0 }
 0x125   :  { %v136_v11 = vmax.f32 %v131_v8, 0.0  ;;  %v313_v12 = vpop.f32.mrb[3].mxu0 }
 0x127   :  { %v137_v13 = vpack.c.bf16 %v136_v11, %v136_v11 }
 0x129   :  { %319 = vmatmul.mubr.msk.bf16.vlgmr.msra.gmra.mrb[0].mxu1 %vm159_vm2, %v137_v13 }
 0x1fc   :  { %v197_v16 = vpop.f32.mrb[0].mxu1 }
 0x1fd   :  { %v198_v17 = vadd.f32 %v292_v15, %v197_v16  ;;  %v320_v18 = vpop.f32.mrb[1].mxu1 }
 0x1fe   :  { %v200_v19 = vpop.f32.mrb[2].mxu1 }
 0x1ff   :  { %v203_v20 = vmax.f32 %v198_v17, 0.0  ;;  %v321_v21 = vpop.f32.mrb[3].mxu1 }
 0x201   :  { %v204_v22 = vpack.c.bf16 %v203_v20, %v203_v20 }
 0x203   :  { %327 = vmatmul.mubr.msk.bf16.vlgmr.msra.gmra.mrb[4].mxu0 %vm159_vm2, %v204_v22 }
 0x2d6   :  { %v265_v24 = vpop.f32.mrb[4].mxu0 }
 0x2d7   :  { %v266_v25 = vadd.f32 %v296_v23, %v265_v24  ;;  %v328_v26 = vpop.f32.mrb[5].mxu0 }
 0x2d8   :  { %v268_v27 = vpop.f32.mrb[6].mxu0 }
 0x2d9   :  { %271 = vst [vmem:[#allocation10] sm:$0xff] %v266_v25  ;;  %v329_v28 = vpop.f32.mrb[7].mxu0 }
 0x2da   :  { %443 = shalt.err (!%p440_p8)
}
 0x2db   :  { %s444_s5 = scalar_lea.hbm %s590_s6, 128 }
 0x2dc   :  { %p445_p9 = scmp.ne.s32.totalorder %s590_s6, %s444_s5  ;;  %p448_p10 = scmp.lt.u32.totalorder %s444_s5, %s590_s6 }
 0x2de   :  { %p450_p11 = pnand %p448_p10, %p445_p9 }
 0x2e0   :  { %453 = shalt.err (!%p450_p11)
}
 0x2e1   :  { %281 = dma.vmem_to_hbm [thread:$0]  %s279_s25, 128, %s590_s6, [#allocation4]  }
 0x2e2   :  { %460 = dma.done.wait [#allocation4], 128  }
 0x2e3   :  { %461 = vsyncadd [#allocation4], 4294967168 }
 0x2e4   :  { %285 = vsyncpa [#allocation3], 1 }
 0x2e5   :  { %286 = vsyncpa [#allocation6], 1 }
 0x2e6   :  { %287 = vsyncpa [#allocation9], 1 }
 0x2e7   :  { %288 = vsyncpa [#allocation4], 1 }

</bundles_post_ra>
